<compile_context>
chip_gen: v5e
topology: v5e:2x2
jax: 0.10.0
libtpu: 0.0.40
codegen_flags: <defaults>
</compile_context>

<pallas_src>
import math

import jax
import jax.numpy as jnp
from jax.experimental import pallas as pl
from jax.experimental.pallas import tpu as pltpu


def _round_up(n, m):
    return ((n + m - 1) // m) * m


def _cdiv(a, b):
    return -(-a // b)


def _pad_cast(a, shape, dtype):
    """Cast to dtype; zero-pad to `shape` only if needed (skip no-op copies)."""
    a = a.astype(dtype)
    if tuple(a.shape) == tuple(shape):
        return a
    idx = tuple(slice(0, s) for s in a.shape)
    return jnp.zeros(shape, dtype).at[idx].set(a)


def _vmem_estimate(tb, in_p, hc, out_p, out_bytes):
    """Rough VMEM bytes for one pipeline stage's buffers."""
    return (
        2 * tb * in_p * 2            # x tile (bf16, double-buffered)
        + 2 * tb * out_p * out_bytes  # out tile (double-buffered)
        + 2 * in_p * hc * 2           # w1 slice (bf16, double-buffered)
        + 2 * 8 * max(hc, 128) * 4    # b1 slice (f32, padded sublanes, x2)
        + 2 * hc * out_p * 2          # w2 slice (bf16, double-buffered)
        + 8 * max(out_p, 128) * 4     # b2 (f32, single-buffered)
        + tb * out_p * 4              # accumulator scratch (f32)
        + tb * hc * 4                 # hidden intermediate (f32)
        + tb * hc * 2                 # bf16 cast of hidden
    )


def _snap_to_divisor(h_p, hc_target):
    """Largest multiple of 128 that is <= hc_target and divides h_p."""
    hc = max(128, (min(hc_target, h_p) // 128) * 128)
    while h_p % hc != 0:
        hc -= 128
    return hc


def _vmem_budget():
    """~85% of physical VMEM (leaves headroom for Mosaic internal scratch)."""
    try:
        cap = int(pltpu.get_tpu_info().vmem_capacity_bytes)
    except Exception:
        cap = 64 << 20  # conservative fallback (works on every generation)
    return int(cap * 0.85)


def _const_spec(shape, index_map):
    """Grid-invariant operand: single buffer if pipeline_mode is available."""
    try:
        return pl.BlockSpec(shape, index_map, pipeline_mode=pl.Buffered(1))
    except (TypeError, AttributeError):
        return pl.BlockSpec(shape, index_map)


def mlp_kernel(x_ref, w1_ref, b1_ref, w2_ref, b2_ref, o_ref, acc_ref):
    # x:  (TB, In_p)  bf16     w1: (In_p, Hc)  bf16    b1: (1, Hc)    f32
    # w2: (Hc, Out_p) bf16     b2: (1, Out_p)  f32     o:  (TB, Out_p) x.dtype
    # acc: (TB, Out_p) f32 scratch, accumulated over the hidden-tile axis.
    h = pl.program_id(1)

    @pl.when(h == 0)
    def _():
        acc_ref[...] = jnp.zeros_like(acc_ref)

    # Linear 1 slice: bf16 MXU matmul, f32 accumulation; bias + ReLU in f32.
    hid = jnp.dot(x_ref[...], w1_ref[...], preferred_element_type=jnp.float32)
    hid = jnp.maximum(hid + b1_ref[...], 0.0)

    # Dropout (eval/inference) == identity.

    # Linear 2 slice: cast hidden to bf16 for the MXU, accumulate in f32.
    acc_ref[...] += jnp.dot(hid.astype(jnp.bfloat16), w2_ref[...],
                            preferred_element_type=jnp.float32)

    @pl.when(h == pl.num_programs(1) - 1)
    def _():
        o_ref[...] = (acc_ref[...] + b2_ref[...]).astype(o_ref.dtype)


def mlp_forward(x, w1, b1, w2, b2, *, block_batch=512, block_hidden=2048):
    """Fused MLP forward: ReLU(x @ w1 + b1) @ w2 + b2 (dropout in eval mode)."""
    B, In = x.shape
    H = w1.shape[1]
    Out = w2.shape[1]
    out_dtype = x.dtype
    out_bytes = jnp.dtype(out_dtype).itemsize

    # Lane-dense (multiple-of-128) feature dims.
    In_p = _round_up(In, 128)
    H_p = _round_up(H, 128)
    Out_p = _round_up(Out, 128)

    # Batch tiling: at least 2 tiles when possible (megacore on v7x), sized
    # from B to minimize padding waste; tiles are multiples of 8 rows.
    n_tiles = max(1, _cdiv(B, block_batch))
    if B > 8:
        n_tiles = max(n_tiles, 2)
    TB = _round_up(_cdiv(B, n_tiles), 8)
    B_p = _round_up(B, TB)
    grid_b = B_p // TB

    # Hidden tiling: pick the largest Hc (<= block_hidden, divides H_p) whose
    # buffer estimate fits the generation-aware VMEM budget.
    budget = _vmem_budget()
    target = min(H_p, block_hidden)
    while True:
        Hc = _snap_to_divisor(H_p, target)
        bytes_needed = _vmem_estimate(TB, In_p, Hc, Out_p, out_bytes)
        if int(bytes_needed * 1.25) <= budget or Hc <= 128:
            break
        target = max(128, Hc // 2)
    grid_h = H_p // Hc
    vmem_limit = min(max(int(bytes_needed * 1.25), 32 << 20), budget)

    # Pad + cast operands (padding skipped when shapes already align).
    # Padded hidden/output columns evaluate to exactly 0 and are sliced off.
    x_p = _pad_cast(x, (B_p, In_p), jnp.bfloat16)
    w1_p = _pad_cast(w1, (In_p, H_p), jnp.bfloat16)
    b1_p = _pad_cast(b1.reshape(1, -1), (1, H_p), jnp.float32)
    w2_p = _pad_cast(w2, (H_p, Out_p), jnp.bfloat16)
    b2_p = _pad_cast(b2.reshape(1, -1), (1, Out_p), jnp.float32)

    out_p = pl.pallas_call(
        mlp_kernel,
        out_shape=jax.ShapeDtypeStruct((B_p, Out_p), out_dtype),
        grid_spec=pltpu.PrefetchScalarGridSpec(
            num_scalar_prefetch=0,
            grid=(grid_b, grid_h),
            in_specs=[
                # batch-tiled activations (invariant along hidden axis)
                pl.BlockSpec((TB, In_p), lambda i, h: (i, 0)),
                # hidden-tiled weight / bias slices (pipeline along h)
                pl.BlockSpec((In_p, Hc), lambda i, h: (0, h)),
                pl.BlockSpec((1, Hc), lambda i, h: (0, h)),
                pl.BlockSpec((Hc, Out_p), lambda i, h: (h, 0)),
                # fully grid-invariant second bias: single-buffered
                _const_spec((1, Out_p), lambda i, h: (0, 0)),
            ],
            out_specs=pl.BlockSpec((TB, Out_p), lambda i, h: (i, 0)),
            scratch_shapes=[pltpu.VMEM((TB, Out_p), jnp.float32)],
        ),
        compiler_params=pltpu.CompilerParams(
            # batch tiles independent (megacore); hidden axis is a reduction
            dimension_semantics=("parallel", "arbitrary"),
            vmem_limit_bytes=vmem_limit,
        ),
    )(x_p, w1_p, b1_p, w2_p, b2_p)

    return out_p[:B, :Out]


def init_mlp_params(key, input_size, output_size):
    """Deterministic init mirroring nn.Linear defaults (uniform +-1/sqrt(fan_in))."""
    hidden_size = round(math.sqrt(input_size * output_size))
    k1, k2, k3, k4 = jax.random.split(key, 4)

    bound1 = 1.0 / math.sqrt(input_size)
    # stored as (in, out) so the kernel computes x @ W directly
    w1 = jax.random.uniform(k1, (input_size, hidden_size), jnp.float32,
                            minval=-bound1, maxval=bound1)
    b1 = jax.random.uniform(k2, (1, hidden_size), jnp.float32,
                            minval=-bound1, maxval=bound1)

    bound2 = 1.0 / math.sqrt(hidden_size)
    w2 = jax.random.uniform(k3, (hidden_size, output_size), jnp.float32,
                            minval=-bound2, maxval=bound2)
    b2 = jax.random.uniform(k4, (1, output_size), jnp.float32,
                            minval=-bound2, maxval=bound2)
    return w1, b1, w2, b2


def mlp_reference(x, w1, b1, w2, b2):
    h = jnp.maximum(x @ w1 + b1, 0.0)
    return h @ w2 + b2


if __name__ == "__main__":
    key = jax.random.PRNGKey(0)
    kx, kp = jax.random.split(key)

    batch = 8
    input_size = 32
    output_size = 8          # hidden_size = round(sqrt(32*8)) = 16

    x = jax.random.normal(kx, (batch, input_size), jnp.float32)
    w1, b1, w2, b2 = init_mlp_params(kp, input_size, output_size)

    out = mlp_forward(x, w1, b1, w2, b2)
    out = jax.block_until_ready(out)

    ref = mlp_reference(x, w1, b1, w2, b2)
    assert out.shape == (batch, output_size)
    # bf16 matmul operands with f32 accumulation -> compare at bf16 tolerance.
    err = float(jnp.max(jnp.abs(out - ref)))
    assert jnp.allclose(out, ref, atol=2e-2, rtol=2e-2), f"max abs err {err}"

    print("KERNEL_OK")
</pallas_src>

<mosaic_0001>
module attributes {stable_mosaic.version = 11 : i64} {
  func.func @mlp_kernel(%arg0: i32, %arg1: i32, %arg2: memref<8x128xbf16, #tpu.memory_space<vmem>>, %arg3: memref<128x128xbf16, #tpu.memory_space<vmem>>, %arg4: memref<1x128xf32, #tpu.memory_space<vmem>>, %arg5: memref<128x128xbf16, #tpu.memory_space<vmem>>, %arg6: memref<1x128xf32, #tpu.memory_space<vmem>>, %arg7: memref<8x128xf32, #tpu.memory_space<vmem>>, %arg8: memref<8x128xf32, #tpu.memory_space<vmem>>) attributes {dimension_semantics = [#tpu.dimension_semantics<parallel>, #tpu.dimension_semantics<arbitrary>], iteration_bounds = array<i64: 1, 1>, scalar_prefetch = 0 : i64, scratch_operands = 1 : i64, tpu.core_type = #tpu.core_type<tc>, window_params = [{transform_indices = @transform_0, window_bounds = array<i64: 8, 128>}, {transform_indices = @transform_1, window_bounds = array<i64: 128, 128>}, {transform_indices = @transform_2, window_bounds = array<i64: 1, 128>}, {transform_indices = @transform_3, window_bounds = array<i64: 128, 128>}, {pipeline_mode = #tpu.pipeline_mode<synchronous>, transform_indices = @transform_4, window_bounds = array<i64: 1, 128>}, {transform_indices = @transform_5, window_bounds = array<i64: 8, 128>}]} {
    %c0_i32 = arith.constant 0 : i32
    %0 = arith.cmpi eq, %arg1, %c0_i32 : i32
    %1 = arith.extui %0 : i1 to i32
    %c0_i32_0 = arith.constant 0 : i32
    %2 = arith.cmpi ne, %1, %c0_i32_0 : i32
    scf.if %2 {
      %cst_16 = arith.constant 0.000000e+00 : f32
      %20 = vector.broadcast %cst_16 : f32 to vector<8x128xf32>
      %c0_17 = arith.constant 0 : index
      %c0_18 = arith.constant 0 : index
      %21 = vector.load %arg8[%c0_17, %c0_18] : memref<8x128xf32, #tpu.memory_space<vmem>>, vector<8x128xf32>
      tpu.vector_store %arg8[%c0_17, %c0_18], %20 {strides = array<i32>} : memref<8x128xf32, #tpu.memory_space<vmem>>, vector<8x128xf32>,
    } else {
    }
    %c0 = arith.constant 0 : index
    %c0_1 = arith.constant 0 : index
    %3 = vector.load %arg2[%c0, %c0_1] : memref<8x128xbf16, #tpu.memory_space<vmem>>, vector<8x128xbf16>
    %c0_2 = arith.constant 0 : index
    %c0_3 = arith.constant 0 : index
    %4 = vector.load %arg3[%c0_2, %c0_3] : memref<128x128xbf16, #tpu.memory_space<vmem>>, vector<128x128xbf16>
    %cst = arith.constant dense<0.000000e+00> : vector<8x128xf32>
    %5 = tpu.matmul %3, %4, %cst {dimension_numbers = #tpu.dot_dimension_numbers<[1], [0], [0], [1], [0, 0, 1, 1], [], []>} : vector<8x128xbf16>, vector<128x128xbf16>, vector<8x128xf32> -> vector<8x128xf32>
    %c0_4 = arith.constant 0 : index
    %c0_5 = arith.constant 0 : index
    %6 = vector.load %arg4[%c0_4, %c0_5] : memref<1x128xf32, #tpu.memory_space<vmem>>, vector<1x128xf32>
    %7 = vector.broadcast %6 : vector<1x128xf32> to vector<8x128xf32>
    %8 = arith.addf %5, %7 : vector<8x128xf32>
    %cst_6 = arith.constant 0.000000e+00 : f32
    %9 = vector.broadcast %cst_6 : f32 to vector<8x128xf32>
    %10 = arith.maximumf %8, %9 : vector<8x128xf32>
    %c0_7 = arith.constant 0 : index
    %c0_8 = arith.constant 0 : index
    %11 = vector.load %arg8[%c0_7, %c0_8] : memref<8x128xf32, #tpu.memory_space<vmem>>, vector<8x128xf32>
    %12 = arith.truncf %10 : vector<8x128xf32> to vector<8x128xbf16>
    %c0_9 = arith.constant 0 : index
    %c0_10 = arith.constant 0 : index
    %13 = vector.load %arg5[%c0_9, %c0_10] : memref<128x128xbf16, #tpu.memory_space<vmem>>, vector<128x128xbf16>
    %cst_11 = arith.constant dense<0.000000e+00> : vector<8x128xf32>
    %14 = tpu.matmul %12, %13, %cst_11 {dimension_numbers = #tpu.dot_dimension_numbers<[1], [0], [0], [1], [0, 0, 1, 1], [], []>} : vector<8x128xbf16>, vector<128x128xbf16>, vector<8x128xf32> -> vector<8x128xf32>
    %15 = arith.addf %11, %14 : vector<8x128xf32>
    %c0_12 = arith.constant 0 : index
    %c0_13 = arith.constant 0 : index
    %16 = vector.load %arg8[%c0_12, %c0_13] : memref<8x128xf32, #tpu.memory_space<vmem>>, vector<8x128xf32>
    tpu.vector_store %arg8[%c0_12, %c0_13], %15 {strides = array<i32>} : memref<8x128xf32, #tpu.memory_space<vmem>>, vector<8x128xf32>,
    %c0_i32_14 = arith.constant 0 : i32
    %17 = arith.cmpi eq, %arg1, %c0_i32_14 : i32
    %18 = arith.extui %17 : i1 to i32
    %c0_i32_15 = arith.constant 0 : i32
    %19 = arith.cmpi ne, %18, %c0_i32_15 : i32
    scf.if %19 {
      %c0_16 = arith.constant 0 : index
      %c0_17 = arith.constant 0 : index
      %20 = vector.load %arg8[%c0_16, %c0_17] : memref<8x128xf32, #tpu.memory_space<vmem>>, vector<8x128xf32>
      %c0_18 = arith.constant 0 : index
      %c0_19 = arith.constant 0 : index
      %21 = vector.load %arg6[%c0_18, %c0_19] : memref<1x128xf32, #tpu.memory_space<vmem>>, vector<1x128xf32>
      %22 = vector.broadcast %21 : vector<1x128xf32> to vector<8x128xf32>
      %23 = arith.addf %20, %22 : vector<8x128xf32>
      %c0_20 = arith.constant 0 : index
      %c0_21 = arith.constant 0 : index
      %24 = vector.load %arg7[%c0_20, %c0_21] : memref<8x128xf32, #tpu.memory_space<vmem>>, vector<8x128xf32>
      tpu.vector_store %arg7[%c0_20, %c0_21], %23 {strides = array<i32>} : memref<8x128xf32, #tpu.memory_space<vmem>>, vector<8x128xf32>,
    } else {
    }
    return
  }
  func.func @transform_0(%arg0: i32, %arg1: i32) -> (i32, i32) {
    %c0_i32 = arith.constant 0 : i32
    %c0_i32_0 = arith.constant 0 : i32
    return %arg0, %c0_i32 : i32, i32
  }
  func.func @transform_1(%arg0: i32, %arg1: i32) -> (i32, i32) {
    %c0_i32 = arith.constant 0 : i32
    %c0_i32_0 = arith.constant 0 : i32
    return %c0_i32, %arg1 : i32, i32
  }
  func.func @transform_2(%arg0: i32, %arg1: i32) -> (i32, i32) {
    %c0_i32 = arith.constant 0 : i32
    %c0_i32_0 = arith.constant 0 : i32
    return %c0_i32, %arg1 : i32, i32
  }
  func.func @transform_3(%arg0: i32, %arg1: i32) -> (i32, i32) {
    %c0_i32 = arith.constant 0 : i32
    %c0_i32_0 = arith.constant 0 : i32
    return %arg1, %c0_i32 : i32, i32
  }
  func.func @transform_4(%arg0: i32, %arg1: i32) -> (i32, i32) {
    %c0_i32 = arith.constant 0 : i32
    %c0_i32_0 = arith.constant 0 : i32
    %c0_i32_1 = arith.constant 0 : i32
    return %c0_i32, %c0_i32_0 : i32, i32
  }
  func.func @transform_5(%arg0: i32, %arg1: i32) -> (i32, i32) {
    %c0_i32 = arith.constant 0 : i32
    %c0_i32_0 = arith.constant 0 : i32
    return %arg0, %c0_i32 : i32, i32
  }
}

</mosaic_0001>

<bundles_post_ra>
// kernel: tpu_custom_call.1
= control target key start
LH: loop header
LB: loop body
LE: loop exit
PB: predicated region body
PF: predicated region fallthrough
CT: control target
= control target key end

     0   :  { %10 = vsyncpa [#allocation4], 0  ;;  %s507_s0 = inlined_call_operand.hbm [shape: bf16[8,128], index: 0, kind: input, shape index: {}]   ;;  %s508_s1 = inlined_call_operand.hbm [shape: bf16[128,128], index: 1, kind: input, shape index: {}]   ;;  %s509_s2 = inlined_call_operand.vmem [shape: f32[1,128], index: 2, kind: input, shape index: {}]   ;;  %s510_s3 = inlined_call_operand.hbm [shape: bf16[128,128], index: 3, kind: input, shape index: {}]   ;;  %s511_s4 = inlined_call_operand.vmem [shape: f32[1,128], index: 4, kind: input, shape index: {}]   ;;  %s512_s5 = inlined_call_operand.hbm [shape: f32[8,128], index: 5, kind: output, shape index: {}]  }
   0x1   :  { %11 = vsyncpa [#allocation7], 0  ;;  %s28_s20 = sshll.u32 %s508_s1, 4  ;;  %s29_s20 = int_to_ptr.hbm [resolvable:$true] %s28_s20 }
   0x2   :  { %12 = vsyncpa [#allocation5], 0  ;;  %s453_s21 = smov [#allocation6]   ;;  %s18_s25 = sshll.u32 %s507_s0, 4  ;;  %s19_s25 = int_to_ptr.hbm [resolvable:$true] %s18_s25 }
   0x3   :  { %s30_s22 = sshll.u32 %s453_s21, 4  ;;  %s454_s26 = smov 64   ;;  %s31_s22 = int_to_ptr.vmem [resolvable:$true] %s30_s22 }
   0x4   :  { %s455_s27 = smov 4   ;;  %s456_s28 = smov [#allocation3]  }
   0x5   :  { %36 = dma.hbm_to_vmem [thread:$0]  %s29_s20, 1024, %s31_s22, [#allocation7], %s454_s26, %s454_s26, %s455_s27  }
   0x6   :  { %s20_s29 = sshll.u32 %s456_s28, 4  ;;  %s43_s7 = sshll.u32 %s510_s3, 4  ;;  %s21_s29 = int_to_ptr.vmem [resolvable:$true] %s20_s29  ;;  %s44_s7 = int_to_ptr.hbm [resolvable:$true] %s43_s7 }
   0x7   :  { %23 = dma.hbm_to_vmem [thread:$0]  %s19_s25, 64, %s21_s29, [#allocation4]  }
   0x8   :  { %s457_s1 = smov [#allocation8]  }
   0x9   :  { %s45_s8 = sshll.u32 %s457_s1, 4  ;;  %s46_s8 = int_to_ptr.vmem [resolvable:$true] %s45_s8 }
   0xa   :  { %51 = dma.hbm_to_vmem [thread:$0]  %s44_s7, 1024, %s46_s8, [#allocation7], %s454_s26, %s454_s26, %s455_s27  }
   0xb   :  { %447 = dma.done.wait [#allocation4], 64  }
   0xc   :  { %448 = vsyncadd [#allocation4], 4294967232 }
   0xd   :  { %449 = dma.done.wait [#allocation7], 2048  }
   0xe   :  { %450 = vsyncadd [#allocation7], 4294965248  ;;  %v334_v0 = vld [vmem:[#allocation6 + $0x38] sm:$0xff]  ;;  %v333_v1 = vld [vmem:[#allocation6 + $0x30] sm:$0xff]  ;;  %s458_s11 = smov [#allocation9]   ;;  %s252_s15 = sshll.u32 %s512_s5, 4  ;;  %s253_s15 = int_to_ptr.hbm [resolvable:$true] %s252_s15 }
   0xf   :  { %140 = vmatpush.bf16.msra.mxu0 %v334_v0  ;;  %v342_v2 = vld [vmem:[#allocation8 + $0x38] sm:$0xff]  ;;  %v341_v3 = vld [vmem:[#allocation8 + $0x30] sm:$0xff]  ;;  %v332_v4 = vld [vmem:[#allocation6 + $0x28] sm:$0xff]  ;;  %s250_s12 = sshll.u32 %s458_s11, 4  ;;  %s251_s12 = int_to_ptr.vmem [resolvable:$true] %s250_s12 }
  0x10   :  { %220 = vmatpush.bf16.msra.mxu1 %v342_v2  ;;  %v340_v5 = vld [vmem:[#allocation8 + $0x28] sm:$0xff]  ;;  %v331_v6 = vld [vmem:[#allocation6 + $0x20] sm:$0xff]  ;;  %v330_v8 = vld [vmem:[#allocation6 + $0x18] sm:$0xff] }
  0x11   :  { %v339_v7 = vld [vmem:[#allocation8 + $0x20] sm:$0xff]  ;;  %v338_v9 = vld [vmem:[#allocation8 + $0x18] sm:$0xff]  ;;  %v329_v10 = vld [vmem:[#allocation6 + $0x10] sm:$0xff] }
  0x12   :  { %v337_v11 = vld [vmem:[#allocation8 + $0x10] sm:$0xff]  ;;  %v328_v12 = vld [vmem:[#allocation6 + $0x8] sm:$0xff]  ;;  %v327_v13 = vld [vmem:[#allocation6] sm:$0xff] }
  0x13   :  { %141 = vmatpush.bf16.msra.mxu0 %v333_v1  ;;  %v71_v14 = vld [vmem:[#allocation3] sm:$0xf]  ;;  %v336_v15 = vld [vmem:[#allocation8 + $0x8] sm:$0xff]  ;;  %v335_v16 = vld [vmem:[#allocation8] sm:$0xff] }
  0x14   :  { %221 = vmatpush.bf16.msra.mxu1 %v341_v3  ;;  %v349_v17 = vld [vmem:[%s509_s2] ss:$0 sm:$0xff] }
  0x15   :  { %v350_v23 = vld [vmem:[%s511_s4] ss:$0 sm:$0xff] }
  0x17   :  { %142 = vmatpush.bf16.msra.mxu0 %v332_v4 }
  0x18   :  { %222 = vmatpush.bf16.msra.mxu1 %v340_v5 }
  0x1b   :  { %143 = vmatpush.bf16.msra.mxu0 %v331_v6 }
  0x1c   :  { %223 = vmatpush.bf16.msra.mxu1 %v339_v7 }
  0x1f   :  { %144 = vmatpush.bf16.msra.mxu0 %v330_v8 }
  0x20   :  { %224 = vmatpush.bf16.msra.mxu1 %v338_v9 }
  0x23   :  { %145 = vmatpush.bf16.msra.mxu0 %v329_v10 }
  0x24   :  { %225 = vmatpush.bf16.msra.mxu1 %v337_v11 }
  0x27   :  { %146 = vmatpush.bf16.msra.mxu0 %v328_v12 }
  0x28   :  { %226 = vmatpush.bf16.msra.mxu1 %v336_v15 }
  0x2b   :  { %147 = vmatpush.bf16.msra.mxu0 %v327_v13 }
  0x2c   :  { %227 = vmatpush.bf16.msra.mxu1 %v335_v16 }
  0x2e   :  { %148 = vmatmul.bf16.vlgmr.msra.gmra.mxu0 %v71_v14 }
  0xab   :  { %v149_v18 = vpop.f32.mrf.mxu0 }
  0xac   :  { %v150_v19 = vadd.f32 %v349_v17, %v149_v18 }
  0xae   :  { %v153_v20 = vmax.f32 %v150_v19, 0.0 }
  0xb0   :  { %v155_v21 = vpack.c.bf16 %v153_v20, %v153_v20 }
  0xb2   :  { %228 = vmatmul.bf16.vlgmr.msra.gmra.mxu1 %v155_v21 }
  0xb3   :  { %v151_v22 = vpop.f32.mrf.mxu0 }
 0x12f   :  { %v229_v24 = vpop.f32.mrf.mxu1 }
 0x130   :  { %v243_v25 = vadd.f32 %v350_v23, %v229_v24 }
 0x132   :  { %244 = vst [vmem:[#allocation9] sm:$0xff] %v243_v25 }
 0x133   :  { %255 = dma.vmem_to_hbm [thread:$0]  %s251_s12, 128, %s253_s15, [#allocation5]  }
 0x137   :  { %v231_v26 = vpop.f32.mrf.mxu1 }
 0x138   :  { %451 = dma.done.wait [#allocation5], 128  }
 0x139   :  { %452 = vsyncadd [#allocation5], 4294967168 }
 0x13a   :  { %260 = vsyncpa [#allocation4], 1 }
 0x13b   :  { %261 = vsyncpa [#allocation7], 1 }
 0x13c   :  { %262 = vsyncpa [#allocation5], 1 }

</bundles_post_ra>
